<compile_context>
chip_gen: v7x
topology: tpu7x:2x2x1
jax: 0.10.0
libtpu: 0.0.40
codegen_flags: <defaults>
</compile_context>

<pallas_src>
import functools

import jax
import jax.numpy as jnp
from jax import lax
from jax.experimental import pallas as pl
from jax.experimental.pallas import tpu as pltpu


def _cnn_kernel(x_ref, w1_ref, b1_ref, w2_ref, b2_ref, o_ref, *, img_h):
    """Fused conv3x3+ReLU -> conv3x3+ReLU -> maxpool2x2 on lane-dense layouts.

    x_ref : (N*H, W*Cin)          rows ordered (n, h), lanes ordered (w, ci)
    w1_ref: (3*W*Cin, W*C)        conv1 banded weights, dy bands stacked along K
    b1_ref: (1, W*C)              bias tiled over w
    w2_ref: (3*W*C, W*C)          conv2 banded weights, output cols = [even w | odd w]
    b2_ref: (1, W*C)              bias tiled + permuted to match
    o_ref : (N*H, (W//2)*C)       even rows = pooled output, odd rows = don't-care
    """
    H = img_h
    NH = x_ref.shape[0]

    # Boundary masks hoisted out of the convs: they depend only on the row
    # (sublane) index, so compute once at width 1 and broadcast in jnp.where.
    h_idx = lax.broadcasted_iota(jnp.int32, (NH, 1), 0) % H
    top = h_idx == 0          # row h == 0     -> no h-1 neighbor
    bot = h_idx == H - 1      # row h == H - 1 -> no h+1 neighbor

    def conv3x3_bias_relu(x, w_ref, b_ref):
        # dy shifts via sublane roll (XLU) + boundary masks (VPU); the dx taps
        # and W-border zero padding are baked into the banded weights.
        # pltpu.roll requires non-negative shifts: shift=NH-1 == shift=-1 mod NH,
        # and the wrapped-around rows are masked to zero anyway.
        x_up = jnp.where(top, 0.0, pltpu.roll(x, shift=1, axis=0))       # row h-1
        x_dn = jnp.where(bot, 0.0, pltpu.roll(x, shift=NH - 1, axis=0))  # row h+1
        # Single MXU matmul per conv: stack the three dy taps along lanes to
        # match the K-stacked banded weight.
        xc = jnp.concatenate([x_up, x, x_dn], axis=1)                    # (NH, 3K)
        acc = jnp.dot(xc, w_ref[...], preferred_element_type=jnp.float32)
        return jnp.maximum(acc + b_ref[...], 0.0)

    h1 = conv3x3_bias_relu(x_ref[...], w1_ref, b1_ref)   # (NH, W*C), natural col order
    h2 = conv3x3_bias_relu(h1, w2_ref, b2_ref)           # (NH, W*C), cols [even w | odd w]

    # ---- MaxPool2d(2, 2), no sublane->lane relayouts ----
    # W pair: contiguous half-lane max (columns pre-permuted to [even w | odd w]).
    # H pair: sublane-pair max via roll; even rows hold the pooled values, odd
    # rows are discarded in the wrapper.
    half = h2.shape[1] // 2                                               # (W//2)*C
    wmax = jnp.maximum(h2[:, :half], h2[:, half:])                        # (NH, half)
    hmax = jnp.maximum(wmax, pltpu.roll(wmax, shift=NH - 1, axis=0))      # row h vs h+1
    o_ref[...] = hmax.astype(o_ref.dtype)


def _banded_conv_weights(w_oihw, img_w):
    """OIHW 3x3 weights -> (3, W*Cin, W*Cout) block-Toeplitz matrices (one per dy).

    B[dy, (w+dx-1)*Cin + ci, w*Cout + co] = w[co, ci, dy, dx] for 0 <= w+dx-1 < W,
    so a single matmul over the (w, ci) lane dim realizes the dx taps and the
    zero padding at the W borders.
    """
    c_out, c_in, kh, kw = w_oihw.shape
    assert (kh, kw) == (3, 3)
    w_hwio = jnp.transpose(w_oihw, (2, 3, 1, 0))          # (dy, dx, ci, co)
    idx = jnp.arange(img_w)
    # band[dx, j, w] = 1  iff  j == w + dx - 1
    band = (idx[None, :, None] == idx[None, None, :] + jnp.arange(3)[:, None, None] - 1)
    band = band.astype(w_hwio.dtype)                      # (3, W, W)
    b = jnp.einsum('xjw,yxio->yjiwo', band, w_hwio)       # (dy, j, ci, w, co)
    return b.reshape(3, img_w * c_in, img_w * c_out)


def cnn_module_forward(x_nchw, w1, b1, w2, b2):
    """Pallas forward. Inputs use PyTorch conventions: x NCHW, weights OIHW."""
    N, Cin, H, W = x_nchw.shape
    C = w1.shape[0]
    assert H % 2 == 0 and W % 2 == 0, "MaxPool2d(2,2) path assumes even H, W"
    # Banded (block-Toeplitz) weight trick is a small-W specialization: K and the
    # weight VMEM footprint grow quadratically in W*C.
    assert W * Cin <= 512 and W * C <= 512, "banded-weight path sized for small W*C"

    # Activations as (rows = (n, h), lanes = (w, c)).
    x_rows = jnp.transpose(x_nchw, (0, 2, 3, 1)).reshape(N * H, W * Cin)

    # Banded weights, dy bands stacked along K for a single matmul per conv.
    wb1 = _banded_conv_weights(w1, W).reshape(3 * W * Cin, W * C)   # (3*W*Cin, W*C)
    wb2 = _banded_conv_weights(w2, W)                               # (3, W*C, W*C)
    b1_row = jnp.tile(b1, W)[None, :]                               # (1, W*C)
    b2_row = jnp.tile(b2, W)[None, :]                               # (1, W*C)

    # Permute conv2's output columns to [even w | odd w] so the kernel's W-pair
    # pooling max is a contiguous half-lane maximum.
    w_order = jnp.concatenate([jnp.arange(0, W, 2), jnp.arange(1, W, 2)])
    col_perm = (w_order[:, None] * C + jnp.arange(C)[None, :]).reshape(-1)
    wb2 = wb2[:, :, col_perm].reshape(3 * W * C, W * C)             # (3*W*C, W*C)
    b2_row = b2_row[:, col_perm]

    NH = N * H
    half = (W // 2) * C
    out_rows = pl.pallas_call(
        functools.partial(_cnn_kernel, img_h=H),
        out_shape=jax.ShapeDtypeStruct((NH, half), jnp.float32),
        grid=(1,),                                        # whole batch in one step
        in_specs=[
            pl.BlockSpec((NH, W * Cin), lambda i: (0, 0)),
            pl.BlockSpec((3 * W * Cin, W * C), lambda i: (0, 0)),
            pl.BlockSpec((1, W * C), lambda i: (0, 0)),
            pl.BlockSpec((3 * W * C, W * C), lambda i: (0, 0)),
            pl.BlockSpec((1, W * C), lambda i: (0, 0)),
        ],
        out_specs=pl.BlockSpec((NH, half), lambda i: (0, 0)),
        compiler_params=pltpu.CompilerParams(dimension_semantics=("arbitrary",)),
    )(x_rows, wb1, b1_row, wb2, b2_row)

    # Even rows hold the pooled outputs (ordered (n, h_out)); restore NCHW.
    out = out_rows[0::2].reshape(N, H // 2, W // 2, C)
    return jnp.transpose(out, (0, 3, 1, 2))


def reference_forward(x_nchw, w1, b1, w2, b2):
    """Pure-JAX reference (NCHW, like torch)."""
    dn = ('NCHW', 'OIHW', 'NCHW')
    y = lax.conv_general_dilated(x_nchw, w1, (1, 1), 'SAME', dimension_numbers=dn)
    y = jax.nn.relu(y + b1[None, :, None, None])
    y = lax.conv_general_dilated(y, w2, (1, 1), 'SAME', dimension_numbers=dn)
    y = jax.nn.relu(y + b2[None, :, None, None])
    y = lax.reduce_window(y, -jnp.inf, lax.max, (1, 1, 2, 2), (1, 1, 2, 2), 'VALID')
    return y


if __name__ == "__main__":
    # Small deterministic setup: previous_channels=4, convolutions=8, 16x16 spatial.
    N, Cin, H, W = 2, 4, 16, 16
    C = 8

    key = jax.random.PRNGKey(0)
    kx, kw1, kb1, kw2, kb2 = jax.random.split(key, 5)
    x = jax.random.normal(kx, (N, Cin, H, W), jnp.float32)
    w1 = jax.random.normal(kw1, (C, Cin, 3, 3), jnp.float32) * 0.2
    b1 = jax.random.normal(kb1, (C,), jnp.float32) * 0.1
    w2 = jax.random.normal(kw2, (C, C, 3, 3), jnp.float32) * 0.2
    b2 = jax.random.normal(kb2, (C,), jnp.float32) * 0.1

    out = jax.block_until_ready(cnn_module_forward(x, w1, b1, w2, b2))
    ref = jax.block_until_ready(reference_forward(x, w1, b1, w2, b2))

    assert out.shape == (N, C, H // 2, W // 2), out.shape
    assert jnp.allclose(out, ref, atol=1e-4, rtol=1e-4), "mismatch vs reference"
    print("KERNEL_OK")
</pallas_src>

<mosaic_0001>
module attributes {stable_mosaic.version = 11 : i64} {
  func.func @_cnn_kernel(%arg0: i32, %arg1: memref<32x64xf32, #tpu.memory_space<vmem>>, %arg2: memref<192x128xf32, #tpu.memory_space<vmem>>, %arg3: memref<1x128xf32, #tpu.memory_space<vmem>>, %arg4: memref<384x128xf32, #tpu.memory_space<vmem>>, %arg5: memref<1x128xf32, #tpu.memory_space<vmem>>, %arg6: memref<32x64xf32, #tpu.memory_space<vmem>>) attributes {dimension_semantics = [#tpu.dimension_semantics<arbitrary>], iteration_bounds = array<i64: 1>, scalar_prefetch = 0 : i64, scratch_operands = 0 : i64, tpu.core_type = #tpu.core_type<tc>, window_params = [{pipeline_mode = #tpu.pipeline_mode<synchronous>, transform_indices = @transform_0, window_bounds = array<i64: 32, 64>}, {pipeline_mode = #tpu.pipeline_mode<synchronous>, transform_indices = @transform_1, window_bounds = array<i64: 192, 128>}, {pipeline_mode = #tpu.pipeline_mode<synchronous>, transform_indices = @transform_2, window_bounds = array<i64: 1, 128>}, {pipeline_mode = #tpu.pipeline_mode<synchronous>, transform_indices = @transform_3, window_bounds = array<i64: 384, 128>}, {pipeline_mode = #tpu.pipeline_mode<synchronous>, transform_indices = @transform_4, window_bounds = array<i64: 1, 128>}, {pipeline_mode = #tpu.pipeline_mode<synchronous>, transform_indices = @transform_5, window_bounds = array<i64: 32, 64>}]} {
    %0 = tpu.iota {dimensions = array<i32: 0>} : vector<32x1xi32>
    %c16_i32 = arith.constant 16 : i32
    %c0_i32 = arith.constant 0 : i32
    %1 = arith.cmpi eq, %c16_i32, %c0_i32 : i32
    %c1_i32 = arith.constant 1 : i32
    %2 = arith.select %1, %c1_i32, %c16_i32 : i32
    %3 = vector.broadcast %2 : i32 to vector<32x1xi32>
    %4 = arith.remsi %0, %3 : vector<32x1xi32>
    %c0_i32_0 = arith.constant 0 : i32
    %5 = vector.broadcast %c0_i32_0 : i32 to vector<32x1xi32>
    %6 = arith.cmpi ne, %4, %5 : vector<32x1xi32>
    %c0_i32_1 = arith.constant 0 : i32
    %7 = vector.broadcast %c0_i32_1 : i32 to vector<32x1xi32>
    %8 = arith.cmpi slt, %4, %7 : vector<32x1xi32>
    %c0_i32_2 = arith.constant 0 : i32
    %9 = arith.cmpi slt, %2, %c0_i32_2 : i32
    %10 = vector.broadcast %9 : i1 to vector<32x1xi1>
    %11 = vector.broadcast %10 : vector<32x1xi1> to vector<32x1xi1>
    %12 = arith.xori %8, %11 : vector<32x1xi1>
    %13 = arith.andi %12, %6 : vector<32x1xi1>
    %14 = vector.broadcast %2 : i32 to vector<32x1xi32>
    %15 = arith.addi %4, %14 : vector<32x1xi32>
    %16 = arith.select %13, %15, %4 : vector<32x1xi1>, vector<32x1xi32>
    %c0_i32_3 = arith.constant 0 : i32
    %17 = vector.broadcast %c0_i32_3 : i32 to vector<32x1xi32>
    %18 = arith.cmpi eq, %16, %17 : vector<32x1xi32>
    %c15_i32 = arith.constant 15 : i32
    %19 = vector.broadcast %c15_i32 : i32 to vector<32x1xi32>
    %20 = arith.cmpi eq, %16, %19 : vector<32x1xi32>
    %c0 = arith.constant 0 : index
    %c0_4 = arith.constant 0 : index
    %21 = vector.load %arg1[%c0, %c0_4] : memref<32x64xf32, #tpu.memory_space<vmem>>, vector<32x64xf32>
    %c1_i32_5 = arith.constant 1 : i32
    %22 = tpu.dynamic_rotate %21 by %c1_i32_5 dim 0 : vector<32x64xf32>, i32 -> vector<32x64xf32>
    %cst = arith.constant 0.000000e+00 : f32
    %23 = vector.shape_cast %18 : vector<32x1xi1> to vector<32x1xi1>
    %24 = vector.broadcast %23 : vector<32x1xi1> to vector<32x64xi1>
    %25 = vector.broadcast %cst : f32 to vector<32x64xf32>
    %26 = arith.select %24, %25, %22 : vector<32x64xi1>, vector<32x64xf32>
    %c31_i32 = arith.constant 31 : i32
    %27 = tpu.dynamic_rotate %21 by %c31_i32 dim 0 : vector<32x64xf32>, i32 -> vector<32x64xf32>
    %cst_6 = arith.constant 0.000000e+00 : f32
    %28 = vector.shape_cast %20 : vector<32x1xi1> to vector<32x1xi1>
    %29 = vector.broadcast %28 : vector<32x1xi1> to vector<32x64xi1>
    %30 = vector.broadcast %cst_6 : f32 to vector<32x64xf32>
    %31 = arith.select %29, %30, %27 : vector<32x64xi1>, vector<32x64xf32>
    %32 = tpu.concatenate %26, %21, %31 in 1 : vector<32x64xf32>, vector<32x64xf32>, vector<32x64xf32> -> vector<32x192xf32>
    %c0_7 = arith.constant 0 : index
    %c0_8 = arith.constant 0 : index
    %33 = vector.load %arg2[%c0_7, %c0_8] : memref<192x128xf32, #tpu.memory_space<vmem>>, vector<192x128xf32>
    %cst_9 = arith.constant dense<0.000000e+00> : vector<32x128xf32>
    %34 = tpu.matmul %32, %33, %cst_9 {dimension_numbers = #tpu.dot_dimension_numbers<[1], [0], [0], [1], [0, 0, 1, 1], [], []>} : vector<32x192xf32>, vector<192x128xf32>, vector<32x128xf32> -> vector<32x128xf32>
    %c0_10 = arith.constant 0 : index
    %c0_11 = arith.constant 0 : index
    %35 = vector.load %arg3[%c0_10, %c0_11] : memref<1x128xf32, #tpu.memory_space<vmem>>, vector<1x128xf32>
    %36 = vector.broadcast %35 : vector<1x128xf32> to vector<32x128xf32>
    %37 = arith.addf %34, %36 : vector<32x128xf32>
    %cst_12 = arith.constant 0.000000e+00 : f32
    %38 = vector.broadcast %cst_12 : f32 to vector<32x128xf32>
    %39 = arith.maximumf %37, %38 : vector<32x128xf32>
    %c1_i32_13 = arith.constant 1 : i32
    %40 = tpu.dynamic_rotate %39 by %c1_i32_13 dim 0 : vector<32x128xf32>, i32 -> vector<32x128xf32>
    %cst_14 = arith.constant 0.000000e+00 : f32
    %41 = vector.shape_cast %18 : vector<32x1xi1> to vector<32x1xi1>
    %42 = vector.broadcast %41 : vector<32x1xi1> to vector<32x128xi1>
    %43 = vector.broadcast %cst_14 : f32 to vector<32x128xf32>
    %44 = arith.select %42, %43, %40 : vector<32x128xi1>, vector<32x128xf32>
    %c31_i32_15 = arith.constant 31 : i32
    %45 = tpu.dynamic_rotate %39 by %c31_i32_15 dim 0 : vector<32x128xf32>, i32 -> vector<32x128xf32>
    %cst_16 = arith.constant 0.000000e+00 : f32
    %46 = vector.shape_cast %20 : vector<32x1xi1> to vector<32x1xi1>
    %47 = vector.broadcast %46 : vector<32x1xi1> to vector<32x128xi1>
    %48 = vector.broadcast %cst_16 : f32 to vector<32x128xf32>
    %49 = arith.select %47, %48, %45 : vector<32x128xi1>, vector<32x128xf32>
    %50 = tpu.concatenate %44, %39, %49 in 1 : vector<32x128xf32>, vector<32x128xf32>, vector<32x128xf32> -> vector<32x384xf32>
    %c0_17 = arith.constant 0 : index
    %c0_18 = arith.constant 0 : index
    %51 = vector.load %arg4[%c0_17, %c0_18] : memref<384x128xf32, #tpu.memory_space<vmem>>, vector<384x128xf32>
    %cst_19 = arith.constant dense<0.000000e+00> : vector<32x128xf32>
    %52 = tpu.matmul %50, %51, %cst_19 {dimension_numbers = #tpu.dot_dimension_numbers<[1], [0], [0], [1], [0, 0, 1, 1], [], []>} : vector<32x384xf32>, vector<384x128xf32>, vector<32x128xf32> -> vector<32x128xf32>
    %c0_20 = arith.constant 0 : index
    %c0_21 = arith.constant 0 : index
    %53 = vector.load %arg5[%c0_20, %c0_21] : memref<1x128xf32, #tpu.memory_space<vmem>>, vector<1x128xf32>
    %54 = vector.broadcast %53 : vector<1x128xf32> to vector<32x128xf32>
    %55 = arith.addf %52, %54 : vector<32x128xf32>
    %cst_22 = arith.constant 0.000000e+00 : f32
    %56 = vector.broadcast %cst_22 : f32 to vector<32x128xf32>
    %57 = arith.maximumf %55, %56 : vector<32x128xf32>
    %58 = vector.extract_strided_slice %57 {offsets = [0, 0], sizes = [32, 64], strides = [1, 1]} : vector<32x128xf32> to vector<32x64xf32>
    %59 = vector.extract_strided_slice %57 {offsets = [0, 64], sizes = [32, 64], strides = [1, 1]} : vector<32x128xf32> to vector<32x64xf32>
    %60 = arith.maximumf %58, %59 : vector<32x64xf32>
    %c31_i32_23 = arith.constant 31 : i32
    %61 = tpu.dynamic_rotate %60 by %c31_i32_23 dim 0 : vector<32x64xf32>, i32 -> vector<32x64xf32>
    %62 = arith.maximumf %60, %61 : vector<32x64xf32>
    %c0_24 = arith.constant 0 : index
    %c0_25 = arith.constant 0 : index
    %63 = vector.load %arg6[%c0_24, %c0_25] : memref<32x64xf32, #tpu.memory_space<vmem>>, vector<32x64xf32>
    tpu.vector_store %arg6[%c0_24, %c0_25], %62 {strides = array<i32>} : memref<32x64xf32, #tpu.memory_space<vmem>>, vector<32x64xf32>,
    return
  }
  func.func @transform_0(%arg0: i32) -> (i32, i32) {
    %c0_i32 = arith.constant 0 : i32
    %c0_i32_0 = arith.constant 0 : i32
    %c0_i32_1 = arith.constant 0 : i32
    return %c0_i32, %c0_i32_0 : i32, i32
  }
  func.func @transform_1(%arg0: i32) -> (i32, i32) {
    %c0_i32 = arith.constant 0 : i32
    %c0_i32_0 = arith.constant 0 : i32
    %c0_i32_1 = arith.constant 0 : i32
    return %c0_i32, %c0_i32_0 : i32, i32
  }
  func.func @transform_2(%arg0: i32) -> (i32, i32) {
    %c0_i32 = arith.constant 0 : i32
    %c0_i32_0 = arith.constant 0 : i32
    %c0_i32_1 = arith.constant 0 : i32
    return %c0_i32, %c0_i32_0 : i32, i32
  }
  func.func @transform_3(%arg0: i32) -> (i32, i32) {
    %c0_i32 = arith.constant 0 : i32
    %c0_i32_0 = arith.constant 0 : i32
    %c0_i32_1 = arith.constant 0 : i32
    return %c0_i32, %c0_i32_0 : i32, i32
  }
  func.func @transform_4(%arg0: i32) -> (i32, i32) {
    %c0_i32 = arith.constant 0 : i32
    %c0_i32_0 = arith.constant 0 : i32
    %c0_i32_1 = arith.constant 0 : i32
    return %c0_i32, %c0_i32_0 : i32, i32
  }
  func.func @transform_5(%arg0: i32) -> (i32, i32) {
    %c0_i32 = arith.constant 0 : i32
    %c0_i32_0 = arith.constant 0 : i32
    %c0_i32_1 = arith.constant 0 : i32
    return %c0_i32, %c0_i32_0 : i32, i32
  }
}

</mosaic_0001>

<bundles_post_ra>
// kernel: tpu_custom_call.1
= control target key start
LH: loop header
LB: loop body
LE: loop exit
PB: predicated region body
PF: predicated region fallthrough
CT: control target
= control target key end

     0   :  { %10 = vsyncpa [#allocation3], 0  ;;  %s1195_s0 = inlined_call_operand.hbm [shape: f32[32,64], index: 0, kind: input, shape index: {}]   ;;  %s1196_s1 = inlined_call_operand.hbm [shape: f32[192,128], index: 1, kind: input, shape index: {}]   ;;  %s1197_s2 = inlined_call_operand.vmem [shape: f32[1,128], index: 2, kind: input, shape index: {}]   ;;  %s1198_s3 = inlined_call_operand.hbm [shape: f32[384,128], index: 3, kind: input, shape index: {}]   ;;  %s1199_s4 = inlined_call_operand.vmem [shape: f32[1,128], index: 4, kind: input, shape index: {}]   ;;  %s1200_s5 = inlined_call_operand.hbm [shape: f32[32,64], index: 5, kind: output, shape index: {}]  }
   0x1   :  { %11 = vsyncpa [#allocation6], 0 }
   0x2   :  { %12 = vsyncpa [#allocation4], 0  ;;  %s947_s18 = smov [#allocation5]   ;;  %s948_s20 = smov [#allocation2]  }
   0x3   :  { %s30_s19 = sshll.u32 %s947_s18, 4  ;;  %s18_s21 = sshll.u32 %s948_s20, 4  ;;  %s31_s19 = int_to_ptr.vmem [resolvable:$true] %s30_s19  ;;  %s985_s21 = int_to_ptr.vmem [resolvable:$true] %s18_s21 }
   0x4   :  { %s853_s24 = scalar_lea.hbm %s1196_s1, 3072 }
   0x5   :  { %p854_p0 = scmp.ne.s32.totalorder %s1196_s1, %s853_s24  ;;  %p857_p1 = scmp.lt.u32.totalorder %s853_s24, %s1196_s1 }
   0x7   :  { %p859_p2 = pnand %p857_p1, %p854_p0 }
   0x9   :  { %862 = shalt.err (!%p859_p2)
}
   0xa   :  { %s863_s29 = scalar_lea.vmem %s31_s19, 3072  ;;  %p868_p4 = scmp.lt.s32.totalorder %s31_s19, %s31_s19 }
   0xb   :  { %p864_p3 = scmp.ne.s32.totalorder %s31_s19, %s863_s29  ;;  %p869_p5 = scmp.lt.s32.totalorder %s863_s29, %s863_s29 }
   0xd   :  { %p870_p6 = por %p869_p5, %p868_p4 }
   0xf   :  { %p871_p7 = pnand %p870_p6, %p864_p3 }
  0x11   :  { %874 = shalt.err (!%p871_p7)
}
  0x12   :  { %s949_s30 = smov 128   ;;  %s950_s6 = smov 8  }
  0x13   :  { %36 = dma.hbm_to_vmem [thread:$0]  %s1196_s1, 3072, %s31_s19, [#allocation6], %s949_s30, %s949_s30, %s950_s6  }
  0x14   :  { %s875_s11 = scalar_lea.hbm %s1195_s0, 512 }
  0x15   :  { %p876_p8 = scmp.ne.s32.totalorder %s1195_s0, %s875_s11  ;;  %p879_p9 = scmp.lt.u32.totalorder %s875_s11, %s1195_s0 }
  0x17   :  { %p881_p10 = pnand %p879_p9, %p876_p8 }
  0x19   :  { %884 = shalt.err (!%p881_p10)
}
  0x1a   :  { %s885_s16 = scalar_lea.vmem %s985_s21, 512  ;;  %p890_p12 = scmp.lt.s32.totalorder %s985_s21, %s985_s21 }
  0x1b   :  { %p886_p11 = scmp.ne.s32.totalorder %s985_s21, %s885_s16  ;;  %p891_p13 = scmp.lt.s32.totalorder %s885_s16, %s885_s16 }
  0x1d   :  { %p892_p0 = por %p891_p13, %p890_p12 }
  0x1f   :  { %p893_p1 = pnand %p892_p0, %p886_p11 }
  0x21   :  { %896 = shalt.err (!%p893_p1)
}
  0x22   :  { %24 = dma.hbm_to_vmem [thread:$0]  %s1195_s0, 512, %s985_s21, [#allocation3], %s949_s30, %s949_s30, %s950_s6  }
  0x23   :  { %s951_s18 = smov [#allocation7]   ;;  %s897_s23 = scalar_lea.hbm %s1198_s3, 6144 }
  0x24   :  { %s44_s19 = sshll.u32 %s951_s18, 4  ;;  %p898_p2 = scmp.ne.s32.totalorder %s1198_s3, %s897_s23  ;;  %s45_s19 = int_to_ptr.vmem [resolvable:$true] %s44_s19 }
  0x25   :  { %p901_p3 = scmp.lt.u32.totalorder %s897_s23, %s1198_s3 }
  0x27   :  { %p903_p4 = pnand %p901_p3, %p898_p2 }
  0x29   :  { %906 = shalt.err (!%p903_p4)
}
  0x2a   :  { %s907_s28 = scalar_lea.vmem %s45_s19, 6144  ;;  %p912_p6 = scmp.lt.s32.totalorder %s45_s19, %s45_s19 }
  0x2b   :  { %p908_p5 = scmp.ne.s32.totalorder %s45_s19, %s907_s28  ;;  %p913_p7 = scmp.lt.s32.totalorder %s907_s28, %s907_s28 }
  0x2d   :  { %p914_p8 = por %p913_p7, %p912_p6 }
  0x2f   :  { %p915_p9 = pnand %p914_p8, %p908_p5 }
  0x31   :  { %918 = shalt.err (!%p915_p9)
}
  0x32   :  { %50 = dma.hbm_to_vmem [thread:$0]  %s1198_s3, 6144, %s45_s19, [#allocation6], %s949_s30, %s949_s30, %s950_s6  }
  0x33   :  { %941 = dma.done.wait [#allocation3], 512  }
  0x34   :  { %942 = vsyncadd [#allocation3], 4294966784 }
  0x35   :  { %943 = dma.done.wait [#allocation6], 9216  }
  0x36   :  { %944 = vsyncadd [#allocation6], 4294958080  ;;  %v62_v0 = vlaneseq  ;;  %v952_v1 = vmov 0.0|0.0   ;;  %v123_v5 = vld [vmem:[#allocation2] sm:$0xff]  ;;  %v124_v6 = vld [vmem:[#allocation2 + $0x8] sm:$0xff]  ;;  %vm185_vm1 = vcmask 523264  }
  0x37   :  { %745 = vmatprep.subr.bf16.mxu0 %v952_v1  ;;  %v125_v7 = vld [vmem:[#allocation2 + $0x10] sm:$0xff]  ;;  %s953_s3 = smov 64   ;;  %v127_v8 = vrot.slane %v123_v5, 7  ;;  %v148_v9 = vrot.slane %v123_v5, 1  ;;  %v128_v10 = vrot.slane %v124_v6, 7  ;;  %v149_v11 = vrot.slane %v124_v6, 1 }
  0x38   :  { %v1038_v2 = vshrl.u32 %v62_v0, 7  ;;  %173 = vrot.lane.b32.xlu0 %v123_v5, %s953_s3  ;;  %177 = vrot.lane.b32.xlu1 %v125_v7, %s953_s3  ;;  %v126_v12 = vld [vmem:[#allocation2 + $0x18] sm:$0xff]  ;;  %v190_v13 = vld [vmem:[#allocation5] sm:$0xff]  ;;  %v129_v14 = vrot.slane %v125_v7, 7  ;;  %v150_v15 = vrot.slane %v125_v7, 1  ;;  %v191_v18 = vld [vmem:[#allocation5 + $0x8] sm:$0xff] }
  0x39   :  { %v130_v16 = vrot.slane %v126_v12, 7  ;;  %v151_v17 = vrot.slane %v126_v12, 1  ;;  %v746_v19 = vpack.c.bf16 %v191_v18, %v190_v13  ;;  %v192_v20 = vld [vmem:[#allocation5 + $0x10] sm:$0xff]  ;;  %v193_v21 = vld [vmem:[#allocation5 + $0x18] sm:$0xff]  ;;  %v194_v31 = vld [vmem:[#allocation5 + $0x20] sm:$0xff] }
  0x3a   :  { %v64_v3 = vadd.s32 8, %v1038_v2  ;;  %vm152_vm0 = vcmp.lt.s32.totalorder %v1038_v2, 7  ;;  %vm131_vm2 = vcmp.lt.s32.totalorder %v1038_v2, 1  ;;  %v749_v29 = vpack.c.bf16 %v193_v21, %v192_v20  ;;  %v195_v32 = vld [vmem:[#allocation5 + $0x28] sm:$0xff]  ;;  %v196_v35 = vld [vmem:[#allocation5 + $0x30] sm:$0xff]  ;;  %v197_v37 = vld [vmem:[#allocation5 + $0x38] sm:$0xff] }
  0x3b   :  { %v155_v22 = vsel %vm152_vm0, %v148_v9, %v149_v11  ;;  %v1053_v24 = vsel %vm131_vm2, %v127_v8, %v128_v10  ;;  %v1058_v25 = vsel %vm131_vm2, %v130_v16, %v127_v8  ;;  %v1062_v26 = vsel %vm152_vm0, %v149_v11, %v150_v15  ;;  %747 = vmatpush1.bf16.msra.mxu0 %v746_v19  ;;  %v362_v38 = vld [vmem:[#allocation7 + $0x80] sm:$0xff]  ;;  %v363_v39 = vld [vmem:[#allocation7 + $0x88] sm:$0xff]  ;;  %v364_v43 = vld [vmem:[#allocation7 + $0x90] sm:$0xff] }
  0x3c   :  { %v78_v4 = vand.u32 15, %v64_v3  ;;  %630 = vmatprep.mubr.msk.f32.mxu0 %vm185_vm1, %v155_v22  ;;  %175 = vrot.lane.b32.xlu0 %v124_v6, %s953_s3  ;;  %v1071_v28 = vsel %vm152_vm0, %v150_v15, %v151_v17  ;;  %v1075_v30 = vsel %vm131_vm2, %v128_v10, %v129_v14  ;;  %v1080_v33 = vsel %vm152_vm0, %v151_v17, %v148_v9  ;;  %v346_v41 = vld [vmem:[#allocation7] sm:$0xff]  ;;  %v347_v42 = vld [vmem:[#allocation7 + $0x8] sm:$0xff]  ;;  %v365_v45 = vld [vmem:[#allocation7 + $0x98] sm:$0xff] }
  0x3d   :  { %179 = vrot.lane.b32.xlu1 %v126_v12, %s953_s3  ;;  %748 = vmatprep.subr.bf16.mxu0 %v952_v1  ;;  %v1084_v34 = vsel %vm131_vm2, %v129_v14, %v130_v16  ;;  %v752_v36 = vpack.c.bf16 %v195_v32, %v194_v31  ;;  %v781_v40 = vpack.c.bf16 %v363_v39, %v362_v38  ;;  %v348_v46 = vld [vmem:[#allocation7 + $0x10] sm:$0xff]  ;;  %v349_v47 = vld [vmem:[#allocation7 + $0x18] sm:$0xff]  ;;  %v366_v49 = vld [vmem:[#allocation7 + $0xa0] sm:$0xff]  ;;  %v71_v22 = vand.u32 15, %v1038_v2 }
  0x3e   :  { %vm1047_vm3 = vcmp.eq.s32.totalorder %v78_v4, 15  ;;  %v783_v44 = vpack.c.bf16 %v347_v42, %v346_v41  ;;  %v785_v48 = vpack.c.bf16 %v365_v45, %v364_v43  ;;  %v367_v50 = vld [vmem:[#allocation7 + $0xa8] sm:$0xff]  ;;  %v755_v51 = vpack.c.bf16 %v197_v37, %v196_v35  ;;  %v198_v52 = vld [vmem:[#allocation5 + $0x40] sm:$0xff]  ;;  %v368_v58 = vld [vmem:[#allocation7 + $0xb0] sm:$0xff] }
  0x3f   :  { %v166_v27 = vsel %vm1047_vm3, 0.0, %v1062_v26  ;;  %750 = vmatpush1.bf16.msra.mxu0 %v749_v29  ;;  %782 = vmatprep.subr.bf16.mxu1 %v781_v40  ;;  %v787_v53 = vpack.c.bf16 %v349_v47, %v348_v46  ;;  %v199_v54 = vld [vmem:[#allocation5 + $0x48] sm:$0xff]  ;;  %v789_v55 = vpack.c.bf16 %v367_v50, %v366_v49  ;;  %v350_v56 = vld [vmem:[#allocation7 + $0x20] sm:$0xff]  ;;  %v369_v59 = vld [vmem:[#allocation7 + $0xb8] sm:$0xff]  ;;  %v65_v29 = vadd.s32 16, %v1038_v2 }
  0x40   :  { %751 = vmatprep.subr.bf16.mxu0 %v952_v1  ;;  %784 = vmatpush3.bf16.msra.mxu1 %v783_v44  ;;  %v351_v57 = vld [vmem:[#allocation7 + $0x28] sm:$0xff]  ;;  %v758_v60 = vpack.c.bf16 %v199_v54, %v198_v52  ;;  %v200_v62 = vld [vmem:[#allocation5 + $0x50] sm:$0xff]  ;;  %v201_v63 = vld [vmem:[#allocation5 + $0x58] sm:$0xff]  ;;  %v793_v0 = vpack.c.bf16 %v369_v59, %v368_v58  ;;  %vm1098_vm4 = vcmp.eq.s32.totalorder %v71_v22, 0  ;;  %v66_v35 = vadd.s32 24, %v1038_v2 }
  0x41   :  { %786 = vmatprep.subr.bf16.mxu1 %v785_v48  ;;  %v791_v61 = vpack.c.bf16 %v351_v57, %v350_v56  ;;  %v761_v3 = vpack.c.bf16 %v201_v63, %v200_v62  ;;  %v202_v4 = vld [vmem:[#allocation5 + $0x60] sm:$0xff]  ;;  %v203_v5 = vld [vmem:[#allocation5 + $0x68] sm:$0xff]  ;;  %v204_v7 = vld [vmem:[#allocation5 + $0x70] sm:$0xff]  ;;  %v85_v32 = vand.u32 15, %v65_v29 }
  0x42   :  { %v764_v6 = vpack.c.bf16 %v203_v5, %v202_v4  ;;  %v205_v8 = vld [vmem:[#allocation5 + $0x78] sm:$0xff]  ;;  %v206_v10 = vld [vmem:[#allocation5 + $0x80] sm:$0xff]  ;;  %v207_v11 = vld [vmem:[#allocation5 + $0x88] sm:$0xff]  ;;  %v92_v39 = vand.u32 15, %v66_v35 }
  0x43   :  { %753 = vmatpush1.bf16.msra.mxu0 %v752_v36  ;;  %v767_v9 = vpack.c.bf16 %v205_v8, %v204_v7  ;;  %v770_v12 = vpack.c.bf16 %v207_v11, %v206_v10  ;;  %v208_v13 = vld [vmem:[#allocation5 + $0x90] sm:$0xff]  ;;  %v209_v14 = vld [vmem:[#allocation5 + $0x98] sm:$0xff]  ;;  %v210_v16 = vld [vmem:[#allocation5 + $0xa0] sm:$0xff]  ;;  %v144_v36 = vsel %vm1098_vm4, 0.0, %v1058_v25  ;;  %vm1107_vm5 = vcmp.eq.s32.totalorder %v85_v32, 0 }
  0x44   :  { %754 = vmatprep.subr.bf16.mxu0 %v952_v1  ;;  %788 = vmatpush3.bf16.msra.mxu1 %v787_v53  ;;  %v773_v15 = vpack.c.bf16 %v209_v14, %v208_v13  ;;  %v211_v17 = vld [vmem:[#allocation5 + $0xa8] sm:$0xff]  ;;  %v212_v19 = vld [vmem:[#allocation5 + $0xb0] sm:$0xff]  ;;  %v213_v20 = vld [vmem:[#allocation5 + $0xb8] sm:$0xff]  ;;  %v146_v25 = vsel %vm1107_vm5, 0.0, %v1075_v30  ;;  %vm1121_vm6 = vcmp.eq.s32.totalorder %v92_v39, 15 }
  0x45   :  { %790 = vmatprep.subr.bf16.mxu1 %v789_v55  ;;  %v776_v18 = vpack.c.bf16 %v211_v17, %v210_v16  ;;  %v779_v21 = vpack.c.bf16 %v213_v20, %v212_v19  ;;  %v352_v30 = vld [vmem:[#allocation7 + $0x30] sm:$0xff]  ;;  %v353_v45 = vld [vmem:[#allocation7 + $0x38] sm:$0xff]  ;;  %v370_v47 = vld [vmem:[#allocation7 + $0xc0] sm:$0xff] }
  0x46   :  { %v795_v46 = vpack.c.bf16 %v353_v45, %v352_v30  ;;  %v354_v49 = vld [vmem:[#allocation7 + $0x40] sm:$0xff]  ;;  %v355_v50 = vld [vmem:[#allocation7 + $0x48] sm:$0xff]  ;;  %v373_v52 = vld [vmem:[#allocation7 + $0xd8] sm:$0xff] }
  0x47   :  { %756 = vmatpush1.bf16.msra.mxu0 %v755_v51  ;;  %v799_v51 = vpack.c.bf16 %v355_v50, %v354_v49  ;;  %v356_v54 = vld [vmem:[#allocation7 + $0x50] sm:$0xff]  ;;  %v357_v55 = vld [vmem:[#allocation7 + $0x58] sm:$0xff]  ;;  %v375_v57 = vld [vmem:[#allocation7 + $0xe8] sm:$0xff] }
  0x48   :  { %757 = vmatprep.subr.bf16.mxu0 %v952_v1  ;;  %792 = vmatpush3.bf16.msra.mxu1 %v791_v61  ;;  %v803_v56 = vpack.c.bf16 %v357_v55, %v356_v54  ;;  %v358_v59 = vld [vmem:[#allocation7 + $0x60] sm:$0xff]  ;;  %v376_v62 = vld [vmem:[#allocation7 + $0xf0] sm:$0xff]  ;;  %v377_v63 = vld [vmem:[#allocation7 + $0xf8] sm:$0xff] }
  0x49   :  { %794 = vmatprep.subr.bf16.mxu1 %v793_v0  ;;  %v809_v0 = vpack.c.bf16 %v377_v63, %v376_v62  ;;  %v361_v4 = vld [vmem:[#allocation7 + $0x78] sm:$0xff]  ;;  %v379_v7 = vld [vmem:[#allocation7 + $0x108] sm:$0xff]  ;;  %vm635_vm7 = vmneg %vm1098_vm4 }
  0x4a   :  { %vm637_vm8 = vmneg %vm1107_vm5  ;;  %v386_v54 = vld [vmem:[#allocation7 + $0x140] sm:$0xff]  ;;  %v387_v55 = vld [vmem:[#allocation7 + $0x148] sm:$0xff] }
  0x4b   :  { %759 = vmatpush1.bf16.msra.mxu0 %v758_v60  ;;  %v359_v60 = vld [vmem:[#allocation7 + $0x68] sm:$0xff]  ;;  %v393_v62 = vld [vmem:[#allocation7 + $0x178] sm:$0xff]  ;;  %vm639_vm9 = vmneg %vm1047_vm3 }
  0x4c   :  { %760 = vmatprep.subr.bf16.mxu0 %v952_v1  ;;  %796 = vmatpush3.bf16.msra.mxu1 %v795_v46  ;;  %v807_v61 = vpack.c.bf16 %v359_v60, %v358_v59  ;;  %v390_v59 = vld [vmem:[#allocation7 + $0x160] sm:$0xff]  ;;  %v391_v60 = vld [vmem:[#allocation7 + $0x168] sm:$0xff]  ;;  %vm641_vm10 = vmneg %vm1121_vm6 }
  0x4f   :  { %762 = vmatpush1.bf16.msra.mxu0 %v761_v3  ;;  %v360_v3 = vld [vmem:[#allocation7 + $0x70] sm:$0xff] }
  0x50   :  { %763 = vmatprep.subr.bf16.mxu0 %v952_v1  ;;  %v811_v5 = vpack.c.bf16 %v361_v4, %v360_v3 }
  0x53   :  { %765 = vmatpush1.bf16.msra.mxu0 %v764_v6  ;;  %v378_v6 = vld [vmem:[#allocation7 + $0x100] sm:$0xff] }
  0x54   :  { %766 = vmatprep.subr.bf16.mxu0 %v952_v1  ;;  %v813_v8 = vpack.c.bf16 %v379_v7, %v378_v6 }
  0x57   :  { %768 = vmatpush1.bf16.msra.mxu0 %v767_v9  ;;  %v629_v9 = vld [vmem:[%s1197_s2] ss:$0 sm:$0xff] }
  0x58   :  { %769 = vmatprep.subr.bf16.mxu0 %v952_v1 }
  0x5b   :  { %771 = vmatpush1.bf16.msra.mxu0 %v770_v12 }
  0x5c   :  { %772 = vmatprep.subr.bf16.mxu0 %v952_v1 }
  0x5f   :  { %774 = vmatpush1.bf16.msra.mxu0 %v773_v15 }
  0x60   :  { %775 = vmatprep.subr.bf16.mxu0 %v952_v1 }
  0x63   :  { %777 = vmatpush1.bf16.msra.mxu0 %v776_v18 }
  0x64   :  { %778 = vmatprep.subr.bf16.mxu0 %v952_v1  ;;  %v837_v1 = vpack.c.bf16 %v391_v60, %v390_v59 }
  0x67   :  { %780 = vmatpush1.bf16.msra.mxu0 %v779_v21 }
  0xaa   :  { %v174_v37 = vpop.permute.xlu0 %173  ;;  %v178_v40 = vpop.permute.xlu1 %177 }
  0xab   :  { %v186_v38 = vsel %vm185_vm1, %v144_v36, %v174_v37  ;;  %v188_v26 = vsel %vm185_vm1, %v146_v25, %v178_v40 }
  0xac   :  { %298 = vmatmul.mubr.f32.vlgmr.msra.gmra.mrb[0].mxu0 %v186_v38 }
  0xad   :  { %631 = vmatprep.mubr.msk.f32.mxu0 %vm185_vm1, %v166_v27  ;;  %v168_v27 = vsel %vm1121_vm6, 0.0, %v1080_v33  ;;  %v372_v33 = vld [vmem:[#allocation7 + $0xd0] sm:$0xff] }
  0xae   :  { %v176_v41 = vpop.permute.xlu0 %175  ;;  %v801_v53 = vpack.c.bf16 %v373_v52, %v372_v33  ;;  %v384_v33 = vld [vmem:[#allocation7 + $0x130] sm:$0xff]  ;;  %v385_v52 = vld [vmem:[#allocation7 + $0x138] sm:$0xff] }
  0xaf   :  { %v187_v42 = vsel %vm185_vm1, %v1053_v24, %v176_v41  ;;  %v180_v44 = vpop.permute.xlu1 %179 }
  0xb0   :  { %303 = vmatmul.mubr.f32.gmra.mrb[2].mxu0 %v187_v42  ;;  %v189_v24 = vsel %vm185_vm1, %v1084_v34, %v180_v44  ;;  %v374_v34 = vld [vmem:[#allocation7 + $0xe0] sm:$0xff]  ;;  %v381_v44 = vld [vmem:[#allocation7 + $0x118] sm:$0xff] }
  0xb1   :  { %632 = vmatprep.mubr.msk.f32.mxu0 %vm185_vm1, %v1071_v28  ;;  %v371_v28 = vld [vmem:[#allocation7 + $0xc8] sm:$0xff]  ;;  %v805_v58 = vpack.c.bf16 %v375_v57, %v374_v34  ;;  %v388_v34 = vld [vmem:[#allocation7 + $0x150] sm:$0xff]  ;;  %v389_v57 = vld [vmem:[#allocation7 + $0x158] sm:$0xff] }
  0xb2   :  { %v797_v48 = vpack.c.bf16 %v371_v28, %v370_v47  ;;  %v382_v28 = vld [vmem:[#allocation7 + $0x120] sm:$0xff] }
  0xb4   :  { %308 = vmatmul.mubr.f32.gmra.mrb[4].mxu0 %v188_v26  ;;  %798 = vmatprep.subr.bf16.mxu1 %v797_v48  ;;  %v380_v26 = vld [vmem:[#allocation7 + $0x110] sm:$0xff]  ;;  %v383_v48 = vld [vmem:[#allocation7 + $0x128] sm:$0xff] }
  0xb5   :  { %633 = vmatprep.mubr.msk.f32.mxu0 %vm185_vm1, %v168_v27  ;;  %800 = vmatpush3.bf16.msra.mxu1 %v799_v51  ;;  %v817_v46 = vpack.c.bf16 %v381_v44, %v380_v26  ;;  %v821_v31 = vpack.c.bf16 %v383_v48, %v382_v28 }
  0xb6   :  { %802 = vmatprep.subr.bf16.mxu1 %v801_v53  ;;  %v825_v53 = vpack.c.bf16 %v385_v52, %v384_v33 }
  0xb8   :  { %313 = vmatmul.mubr.f32.gmra.mrb[6].mxu0 %v189_v24 }
  0xb9   :  { %804 = vmatpush3.bf16.msra.mxu1 %v803_v56  ;;  %v829_v56 = vpack.c.bf16 %v387_v55, %v386_v54 }
  0xba   :  { %806 = vmatprep.subr.bf16.mxu1 %v805_v58  ;;  %v833_v58 = vpack.c.bf16 %v389_v57, %v388_v34 }
  0xbd   :  { %808 = vmatpush3.bf16.msra.mxu1 %v807_v61  ;;  %v392_v61 = vld [vmem:[#allocation7 + $0x170] sm:$0xff] }
  0xbe   :  { %810 = vmatprep.subr.bf16.mxu1 %v809_v0  ;;  %v841_v63 = vpack.c.bf16 %v393_v62, %v392_v61 }
  0xc1   :  { %812 = vmatpush3.bf16.msra.mxu1 %v811_v5 }
  0xc2   :  { %814 = vmatprep.subr.bf16.mxu1 %v813_v8 }
 0x17f   :  { %v299_v10 = vpop.f32.mrb[0].mxu0 }
 0x180   :  { %v300_v11 = vadd.f32 %v629_v9, %v299_v10  ;;  %v301_v12 = vpop.f32.mrb[1].mxu0 }
 0x182   :  { %v318_v13 = vmax.f32 %v300_v11, 0.0 }
 0x183   :  { %v304_v14 = vpop.f32.mrb[2].mxu0 }
 0x184   :  { %v305_v15 = vadd.f32 %v629_v9, %v304_v14  ;;  %v306_v16 = vpop.f32.mrb[3].mxu0  ;;  %465 = vmatprep.mubr.f32.mxu1 %v318_v13  ;;  %v322_v18 = vrot.slane %v318_v13, 7  ;;  %v334_v20 = vrot.slane %v318_v13, 1  ;;  %v634_v13 = vld [vmem:[%s1199_s4] ss:$0 sm:$0xff]  ;;  %s954_s4 = smov [#allocation8]  }
 0x185   :  { %s616_s9 = sshll.u32 %s954_s4, 4  ;;  %s617_s9 = int_to_ptr.vmem [resolvable:$true] %s616_s9 }
 0x186   :  { %v319_v17 = vmax.f32 %v305_v15, 0.0  ;;  %s919_s10 = scalar_lea.vmem %s617_s9, 512  ;;  %p924_p11 = scmp.lt.s32.totalorder %s617_s9, %s617_s9 }
 0x187   :  { %v309_v19 = vpop.f32.mrb[4].mxu0  ;;  %p920_p10 = scmp.ne.s32.totalorder %s617_s9, %s919_s10  ;;  %p925_p12 = scmp.lt.s32.totalorder %s919_s10, %s919_s10 }
 0x188   :  { %v323_v21 = vrot.slane %v319_v17, 7  ;;  %v335_v22 = vrot.slane %v319_v17, 1  ;;  %v310_v29 = vadd.f32 %v629_v9, %v309_v19  ;;  %v311_v32 = vpop.f32.mrb[5].mxu0 }
 0x189   :  { %p926_p13 = por %p925_p12, %p924_p11 }
 0x18a   :  { %v320_v35 = vmax.f32 %v310_v29, 0.0  ;;  %v328_v36 = vsel %vm131_vm2, %v322_v18, %v323_v21  ;;  %v340_v37 = vsel %vm152_vm0, %v334_v20, %v335_v22 }
 0x18b   :  { %v314_v38 = vpop.f32.mrb[6].mxu0  ;;  %p927_p0 = pnand %p926_p13, %p920_p10 }
 0x18c   :  { %v324_v39 = vrot.slane %v320_v35, 7  ;;  %v336_v40 = vrot.slane %v320_v35, 1  ;;  %v315_v41 = vadd.f32 %v629_v9, %v314_v38  ;;  %v316_v25 = vpop.f32.mrb[7].mxu0 }
 0x18e   :  { %v321_v42 = vmax.f32 %v315_v41, 0.0  ;;  %v327_v27 = vsel %vm131_vm2, %v323_v21, %v324_v39  ;;  %v339_v24 = vsel %vm152_vm0, %v335_v22, %v336_v40 }
 0x190   :  { %v325_v30 = vrot.slane %v321_v42, 7  ;;  %v337_v45 = vrot.slane %v321_v42, 1 }
 0x192   :  { %v329_v47 = vsel %vm131_vm2, %v325_v30, %v322_v18  ;;  %v326_v49 = vsel %vm131_vm2, %v324_v39, %v325_v30  ;;  %v338_v50 = vsel %vm152_vm0, %v336_v40, %v337_v45  ;;  %v341_v51 = vsel %vm152_vm0, %v337_v45, %v334_v20 }
 0x193   :  { %636 = vmatmul.mubr.msk.f32.vlgmr.msra.gmra.mrb[0].mxu1 %vm635_vm7, %v329_v47 }
 0x194   :  { %816 = vmatpush3.bf16.msra.mxu1 %v813_v8  ;;  %470 = vmatprep.mubr.f32.mxu1 %v319_v17 }
 0x195   :  { %818 = vmatprep.subr.bf16.mxu1 %v817_v46 }
 0x197   :  { %471 = vmatmul.mubr.f32.gmra.mrb[2].mxu1 %v328_v36 }
 0x198   :  { %820 = vmatpush3.bf16.msra.mxu1 %v817_v46  ;;  %475 = vmatprep.mubr.f32.mxu1 %v320_v35 }
 0x199   :  { %822 = vmatprep.subr.bf16.mxu1 %v821_v31 }
 0x19b   :  { %638 = vmatmul.mubr.msk.f32.gmra.mrb[4].mxu1 %vm637_vm8, %v327_v27 }
 0x19c   :  { %824 = vmatpush3.bf16.msra.mxu1 %v821_v31  ;;  %480 = vmatprep.mubr.f32.mxu1 %v321_v42 }
 0x19d   :  { %826 = vmatprep.subr.bf16.mxu1 %v825_v53 }
 0x19f   :  { %481 = vmatmul.mubr.f32.gmra.mrb[6].mxu1 %v326_v49 }
 0x1a0   :  { %828 = vmatpush3.bf16.msra.mxu1 %v825_v53  ;;  %739 = vmatprep.mubr.f32.mxu1 %v340_v37 }
 0x1a1   :  { %830 = vmatprep.subr.bf16.mxu1 %v829_v56 }
 0x1a4   :  { %832 = vmatpush3.bf16.msra.mxu1 %v829_v56 }
 0x1a5   :  { %834 = vmatprep.subr.bf16.mxu1 %v833_v58 }
 0x1a8   :  { %836 = vmatpush3.bf16.msra.mxu1 %v833_v58 }
 0x1a9   :  { %838 = vmatprep.subr.bf16.mxu1 %v837_v1 }
 0x1ac   :  { %840 = vmatpush3.bf16.msra.mxu1 %v837_v1 }
 0x1ad   :  { %842 = vmatprep.subr.bf16.mxu1 %v841_v63 }
 0x1b0   :  { %844 = vmatpush3.bf16.msra.mxu1 %v841_v63 }
 0x1b3   :  { %740 = vmatmul.mubr.msk.f32.vlgmr.msra.gmra.mrb[8].mxu1 %vm639_vm9, %v339_v24 }
 0x1b4   :  { %742 = vmatprep.mubr.f32.mxu1 %v338_v50 }
 0x1b7   :  { %743 = vmatmul.mubr.msk.f32.gmra.mrb[10].mxu1 %vm641_vm10, %v341_v51 }
 0x266   :  { %v675_v0 = vpop.f32.mrb[0].mxu1 }
 0x267   :  { %v676_v3 = vpop.f32.mrb[1].mxu1 }
 0x268   :  { %v677_v4 = vadd.f32 %v676_v3, %v675_v0 }
 0x26a   :  { %v678_v5 = vpop.f32.mrb[2].mxu1  ;;  %v468_v15 = vadd.f32 %v677_v4, %v634_v13 }
 0x26b   :  { %v679_v6 = vpop.f32.mrb[3].mxu1 }
 0x26c   :  { %v680_v7 = vadd.f32 %v679_v6, %v678_v5 }
 0x26e   :  { %v681_v8 = vpop.f32.mrb[4].mxu1  ;;  %v473_v14 = vadd.f32 %v680_v7, %v634_v13 }
 0x26f   :  { %v682_v9 = vpop.f32.mrb[5].mxu1 }
 0x270   :  { %v683_v10 = vadd.f32 %v682_v9, %v681_v8 }
 0x272   :  { %v684_v11 = vpop.f32.mrb[6].mxu1  ;;  %v478_v29 = vadd.f32 %v683_v10, %v634_v13 }
 0x273   :  { %v685_v12 = vpop.f32.mrb[7].mxu1 }
 0x274   :  { %v686_v23 = vadd.f32 %v685_v12, %v684_v11 }
 0x276   :  { %v483_v20 = vadd.f32 %v686_v23, %v634_v13 }
 0x286   :  { %v741_v43 = vpop.f32.mrb[8].mxu1 }
 0x287   :  { %v558_v16 = vadd.f32 %v741_v43, %v473_v14  ;;  %v552_v17 = vpop.f32.mrb[9].mxu1 }
 0x288   :  { %v553_v18 = vadd.f32 %v552_v17, %v468_v15 }
 0x289   :  { %v572_v19 = vmax.f32 %v558_v16, 0.0 }
 0x28a   :  { %v571_v21 = vmax.f32 %v553_v18, 0.0  ;;  %v744_v22 = vpop.f32.mrb[10].mxu1 }
 0x28b   :  { %v568_v32 = vadd.f32 %v744_v22, %v483_v20  ;;  %581 = vrot.lane.b32.xlu1 %v572_v19, %s953_s3  ;;  %v562_v35 = vpop.f32.mrb[11].mxu1 }
 0x28c   :  { %v563_v36 = vadd.f32 %v562_v35, %v478_v29  ;;  %579 = vrot.lane.b32.xlu0 %v571_v21, %s953_s3 }
 0x28d   :  { %v574_v37 = vmax.f32 %v568_v32, 0.0 }
 0x28e   :  { %v573_v38 = vmax.f32 %v563_v36, 0.0 }
 0x28f   :  { %585 = vrot.lane.b32.xlu1 %v574_v37, %s953_s3 }
 0x290   :  { %583 = vrot.lane.b32.xlu0 %v573_v38, %s953_s3 }
 0x2fd   :  { %v582_v39 = vpop.permute.xlu1 %581 }
 0x2fe   :  { %v592_v40 = vmax.f32 %v572_v19, %v582_v39  ;;  %v580_v41 = vpop.permute.xlu0 %579 }
 0x2ff   :  { %v591_v25 = vmax.f32 %v571_v21, %v580_v41 }
 0x300   :  { %v596_v42 = vrot.slane %v592_v40, 1 }
 0x301   :  { %v595_v26 = vrot.slane %v591_v25, 1  ;;  %v586_v44 = vpop.permute.xlu1 %585 }
 0x302   :  { %v594_v27 = vmax.f32 %v574_v37, %v586_v44  ;;  %v584_v24 = vpop.permute.xlu0 %583 }
 0x303   :  { %v601_v30 = vsel %vm152_vm0, %v595_v26, %v596_v42  ;;  %v593_v45 = vmax.f32 %v573_v38, %v584_v24 }
 0x304   :  { %v603_v46 = vmax.f32 %v591_v25, %v601_v30  ;;  %v598_v47 = vrot.slane %v594_v27, 1 }
 0x305   :  { %v597_v28 = vrot.slane %v593_v45, 1 }
 0x306   :  { %607 = vst.msk [vmem:[#allocation8] sm:$0xff] %vm185_vm1, %v603_v46  ;;  %v602_v48 = vsel %vm152_vm0, %v598_v47, %v595_v26 }
 0x307   :  { %v606_v49 = vmax.f32 %v594_v27, %v602_v48  ;;  %v599_v50 = vsel %vm152_vm0, %v597_v28, %v598_v47  ;;  %v600_v51 = vsel %vm152_vm0, %v596_v42, %v597_v28 }
 0x308   :  { %v604_v31 = vmax.f32 %v592_v40, %v600_v51  ;;  %v605_v33 = vmax.f32 %v593_v45, %v599_v50 }
 0x309   :  { %610 = vst.msk [vmem:[#allocation8 + $0x18] sm:$0xff] %vm185_vm1, %v606_v49 }
 0x30a   :  { %609 = vst.msk [vmem:[#allocation8 + $0x10] sm:$0xff] %vm185_vm1, %v605_v33  ;;  %608 = vst.msk [vmem:[#allocation8 + $0x8] sm:$0xff] %vm185_vm1, %v604_v31 }
 0x30b   :  { %930 = shalt.err (!%p927_p0)
}
 0x30c   :  { %s931_s13 = scalar_lea.hbm %s1200_s5, 512 }
 0x30d   :  { %p932_p1 = scmp.ne.s32.totalorder %s1200_s5, %s931_s13  ;;  %p935_p2 = scmp.lt.u32.totalorder %s931_s13, %s1200_s5 }
 0x30f   :  { %p937_p3 = pnand %p935_p2, %p932_p1 }
 0x311   :  { %940 = shalt.err (!%p937_p3)
}
 0x312   :  { %622 = dma.vmem_to_hbm [thread:$0]  %s617_s9, 512, %s1200_s5, [#allocation4], %s949_s30, %s949_s30, %s950_s6  }
 0x313   :  { %945 = dma.done.wait [#allocation4], 512  }
 0x314   :  { %946 = vsyncadd [#allocation4], 4294966784 }
 0x315   :  { %626 = vsyncpa [#allocation3], 1 }
 0x316   :  { %627 = vsyncpa [#allocation6], 1 }
 0x317   :  { %628 = vsyncpa [#allocation4], 1 }

</bundles_post_ra>
